<compile_context>
chip_gen: v7x
topology: tpu7x:2x2x1
jax: 0.10.0
libtpu: 0.0.40
codegen_flags: <defaults>
</compile_context>

<pallas_src>
import jax
import jax.numpy as jnp
from jax.experimental import pallas as pl
from jax.experimental.pallas import tpu as pltpu

INPUT_LEN = 32          # the original code sets this global at training time
H1 = 256
H2 = 10
H3 = 1
H2_PAD = 128            # pad 10 -> 128 lanes (inert: relu(0)=0, zero weights)


def _round_up(n, m):
    return ((n + m - 1) // m) * m


def _mlp_kernel(x_ref, w1_ref, b1_ref, w2_ref, b2_ref, w3_ref, b3_ref, o_ref):
    """Fused 3-layer MLP forward for one batch tile (bf16 MXU, f32 accumulate)."""
    # x.float() in the reference; cast straight to bf16 as the MXU input dtype.
    x = x_ref[...].astype(jnp.bfloat16)

    # layer1 + ReLU : [TB, D_in] @ [D_in, 256] -> [TB, 256], f32 accumulation.
    h1 = jnp.dot(x, w1_ref[...], preferred_element_type=jnp.float32) + b1_ref[...]
    h1 = jnp.maximum(h1, 0.0).astype(jnp.bfloat16)

    # layer2 + ReLU : [TB, 256] @ [256, 128(pad of 10)] -> [TB, 128].
    h2 = jnp.dot(h1, w2_ref[...], preferred_element_type=jnp.float32) + b2_ref[...]
    h2 = jnp.maximum(h2, 0.0)

    # layer3 : width-1 output via f32 lane reduction (XLU slot, hides under MXU);
    # padding lanes of w3 are zero so the reduction is exact.
    o_ref[...] = jnp.sum(h2 * w3_ref[...], axis=-1, keepdims=True) + b3_ref[0, 0]


def prepare_params(params):
    """One-time (outside the hot path) weight prep:
       - pad the narrow layers 10 -> 128 lanes with zeros,
       - cast the two MXU weight operands to bf16,
       - keep biases / the layer-3 row in f32.
    Input params are stored transposed ([in, out], i.e. PyTorch W.T)."""
    w1, b1, w2, b2, w3, b3 = params
    w2p = jnp.zeros((H1, H2_PAD), jnp.float32).at[:, :H2].set(w2)
    b2p = jnp.zeros((1, H2_PAD), jnp.float32).at[:, :H2].set(b2)
    w3_row = jnp.zeros((1, H2_PAD), jnp.float32).at[0, :H2].set(w3[:, 0])
    b3p = jnp.reshape(b3, (1, 1)).astype(jnp.float32)
    return (w1.astype(jnp.bfloat16),                       # MXU operand
            jnp.reshape(b1, (1, H1)).astype(jnp.float32),  # f32 bias
            w2p.astype(jnp.bfloat16),                      # MXU operand
            b2p,                                           # f32 bias
            w3_row,                                        # f32 layer-3 row
            b3p)                                           # f32 scalar (SMEM)


def nn_forward(x, padded_params, *, tile_b=2048):
    """x: [B, INPUT_LEN] (any float dtype). Returns [B, 1] float32."""
    w1, b1, w2p, b2p, w3_row, b3p = padded_params
    B, D = x.shape
    assert D == w1.shape[0], (D, w1.shape)

    # Batch tile: multiple of 8.  For B >= 16, force at least 2 grid steps so
    # the "parallel" grid axis can be sharded across v7x's two TensorCores.
    if B >= 16:
        tb = min(tile_b, _round_up(-(-B // 2), 8))
    else:
        tb = max(8, _round_up(B, 8))
    grid = (pl.cdiv(B, tb),)   # partial tail block handled by Pallas (no jnp.pad)

    flops = 2 * B * (D * H1 + H1 * H2_PAD + H2_PAD)
    bytes_accessed = int(B * D * x.dtype.itemsize + B * 4
                         + sum(int(p.size) * p.dtype.itemsize for p in padded_params))

    out = pl.pallas_call(
        _mlp_kernel,
        out_shape=jax.ShapeDtypeStruct((B, H3), jnp.float32),
        grid=grid,
        in_specs=[
            pl.BlockSpec((tb, D), lambda i: (i, 0)),            # x: batch-tiled
            pl.BlockSpec((D, H1), lambda i: (0, 0)),            # weights resident
            pl.BlockSpec((1, H1), lambda i: (0, 0)),
            pl.BlockSpec((H1, H2_PAD), lambda i: (0, 0)),
            pl.BlockSpec((1, H2_PAD), lambda i: (0, 0)),
            pl.BlockSpec((1, H2_PAD), lambda i: (0, 0)),
            pl.BlockSpec(memory_space=pltpu.MemorySpace.SMEM),  # b3 scalar
        ],
        out_specs=pl.BlockSpec((tb, H3), lambda i: (i, 0)),
        compiler_params=pltpu.CompilerParams(
            dimension_semantics=("parallel",),
            vmem_limit_bytes=32 * 1024 * 1024),
        cost_estimate=pl.CostEstimate(
            flops=flops, transcendentals=0, bytes_accessed=bytes_accessed),
    )(x, w1, b1, w2p, b2p, w3_row, b3p)

    return out                                                  # [B, 1]


def init_params(key):
    """Deterministic init mimicking PyTorch nn.Linear default (uniform +-1/sqrt(fan_in)).
    Weights are stored transposed: [in, out]."""
    ks = jax.random.split(key, 6)

    def lin(kw, kb, fan_in, fan_out):
        bound = 1.0 / jnp.sqrt(jnp.asarray(fan_in, jnp.float32))
        w = jax.random.uniform(kw, (fan_in, fan_out), jnp.float32, -bound, bound)
        b = jax.random.uniform(kb, (fan_out,), jnp.float32, -bound, bound)
        return w, b

    w1, b1 = lin(ks[0], ks[1], INPUT_LEN, H1)
    w2, b2 = lin(ks[2], ks[3], H1, H2)
    w3, b3 = lin(ks[4], ks[5], H2, H3)
    return (w1, b1, w2, b2, w3, b3)


def _reference(x, params):
    w1, b1, w2, b2, w3, b3 = params
    h = jnp.maximum(x.astype(jnp.float32) @ w1 + b1, 0.0)
    h = jnp.maximum(h @ w2 + b2, 0.0)
    return h @ w3 + b3


if __name__ == "__main__":
    key = jax.random.PRNGKey(0)
    k_x, k_p = jax.random.split(key)

    params = init_params(k_p)
    padded = prepare_params(params)          # done once, outside the hot path

    # bf16 MXU inputs with f32 accumulation -> relaxed tolerance vs f32 reference.
    ATOL = RTOL = 5e-2

    # Case 1: small batch, single partial tile (B=13, block of 16 rows, grid=(1,)).
    B = 13
    x = jax.random.normal(k_x, (B, INPUT_LEN), jnp.float32)
    out = jax.block_until_ready(nn_forward(x, padded))
    ref = _reference(x, params)
    assert out.shape == (B, 1), out.shape
    assert bool(jnp.all(jnp.isfinite(out)))
    assert jnp.allclose(out, ref, atol=ATOL, rtol=RTOL), (
        f"max abs err {jnp.max(jnp.abs(out - ref))}")

    # Case 2: multiple tiles with a partial tail (tile_b=8, B=22 -> grid=(3,)).
    B2 = 22
    x2 = jax.random.normal(jax.random.PRNGKey(1), (B2, INPUT_LEN), jnp.float32)
    out2 = jax.block_until_ready(nn_forward(x2, padded, tile_b=8))
    ref2 = _reference(x2, params)
    assert out2.shape == (B2, 1), out2.shape
    assert bool(jnp.all(jnp.isfinite(out2)))
    assert jnp.allclose(out2, ref2, atol=ATOL, rtol=RTOL), (
        f"max abs err {jnp.max(jnp.abs(out2 - ref2))}")

    # Case 3: default tile path — B=300 splits into 2 tiles of 152 (partial tail),
    # exercising the ">=2 grid steps" rule used for v7x TensorCore sharding.
    B3 = 300
    x3 = jax.random.normal(jax.random.PRNGKey(2), (B3, INPUT_LEN), jnp.float32)
    out3 = jax.block_until_ready(nn_forward(x3, padded))
    ref3 = _reference(x3, params)
    assert out3.shape == (B3, 1), out3.shape
    assert bool(jnp.all(jnp.isfinite(out3)))
    assert jnp.allclose(out3, ref3, atol=ATOL, rtol=RTOL), (
        f"max abs err {jnp.max(jnp.abs(out3 - ref3))}")

    print("KERNEL_OK")
</pallas_src>

<mosaic_0001>
module attributes {stable_mosaic.version = 11 : i64} {
  func.func @_mlp_kernel(%arg0: i32, %arg1: memref<16x32xf32, #tpu.memory_space<vmem>>, %arg2: memref<32x256xbf16, #tpu.memory_space<vmem>>, %arg3: memref<1x256xf32, #tpu.memory_space<vmem>>, %arg4: memref<256x128xbf16, #tpu.memory_space<vmem>>, %arg5: memref<1x128xf32, #tpu.memory_space<vmem>>, %arg6: memref<1x128xf32, #tpu.memory_space<vmem>>, %arg7: memref<1x1xf32, #tpu.memory_space<smem>>, %arg8: memref<16x1xf32, #tpu.memory_space<vmem>>) attributes {dimension_semantics = [#tpu.dimension_semantics<parallel>], iteration_bounds = array<i64: 1>, scalar_prefetch = 0 : i64, scratch_operands = 0 : i64, tpu.core_type = #tpu.core_type<tc>, window_params = [{transform_indices = @transform_0, window_bounds = array<i64: 16, 32>}, {pipeline_mode = #tpu.pipeline_mode<synchronous>, transform_indices = @transform_1, window_bounds = array<i64: 32, 256>}, {pipeline_mode = #tpu.pipeline_mode<synchronous>, transform_indices = @transform_2, window_bounds = array<i64: 1, 256>}, {pipeline_mode = #tpu.pipeline_mode<synchronous>, transform_indices = @transform_3, window_bounds = array<i64: 256, 128>}, {pipeline_mode = #tpu.pipeline_mode<synchronous>, transform_indices = @transform_4, window_bounds = array<i64: 1, 128>}, {pipeline_mode = #tpu.pipeline_mode<synchronous>, transform_indices = @transform_5, window_bounds = array<i64: 1, 128>}, {transform_indices = @transform_6, window_bounds = array<i64: 1, 1>}, {transform_indices = @transform_7, window_bounds = array<i64: 16, 1>}]} {
    %c0 = arith.constant 0 : index
    %c0_0 = arith.constant 0 : index
    %0 = vector.load %arg1[%c0, %c0_0] : memref<16x32xf32, #tpu.memory_space<vmem>>, vector<16x32xf32>
    %1 = arith.truncf %0 : vector<16x32xf32> to vector<16x32xbf16>
    %c0_1 = arith.constant 0 : index
    %c0_2 = arith.constant 0 : index
    %2 = vector.load %arg2[%c0_1, %c0_2] : memref<32x256xbf16, #tpu.memory_space<vmem>>, vector<32x256xbf16>
    %cst = arith.constant dense<0.000000e+00> : vector<16x256xf32>
    %3 = tpu.matmul %1, %2, %cst {dimension_numbers = #tpu.dot_dimension_numbers<[1], [0], [0], [1], [0, 0, 1, 1], [], []>} : vector<16x32xbf16>, vector<32x256xbf16>, vector<16x256xf32> -> vector<16x256xf32>
    %c0_3 = arith.constant 0 : index
    %c0_4 = arith.constant 0 : index
    %4 = vector.load %arg3[%c0_3, %c0_4] : memref<1x256xf32, #tpu.memory_space<vmem>>, vector<1x256xf32>
    %5 = vector.broadcast %4 : vector<1x256xf32> to vector<16x256xf32>
    %6 = arith.addf %3, %5 : vector<16x256xf32>
    %cst_5 = arith.constant 0.000000e+00 : f32
    %7 = vector.broadcast %cst_5 : f32 to vector<16x256xf32>
    %8 = arith.maximumf %6, %7 : vector<16x256xf32>
    %9 = arith.truncf %8 : vector<16x256xf32> to vector<16x256xbf16>
    %c0_6 = arith.constant 0 : index
    %c0_7 = arith.constant 0 : index
    %10 = vector.load %arg4[%c0_6, %c0_7] : memref<256x128xbf16, #tpu.memory_space<vmem>>, vector<256x128xbf16>
    %cst_8 = arith.constant dense<0.000000e+00> : vector<16x128xf32>
    %11 = tpu.matmul %9, %10, %cst_8 {dimension_numbers = #tpu.dot_dimension_numbers<[1], [0], [0], [1], [0, 0, 1, 1], [], []>} : vector<16x256xbf16>, vector<256x128xbf16>, vector<16x128xf32> -> vector<16x128xf32>
    %c0_9 = arith.constant 0 : index
    %c0_10 = arith.constant 0 : index
    %12 = vector.load %arg5[%c0_9, %c0_10] : memref<1x128xf32, #tpu.memory_space<vmem>>, vector<1x128xf32>
    %13 = vector.broadcast %12 : vector<1x128xf32> to vector<16x128xf32>
    %14 = arith.addf %11, %13 : vector<16x128xf32>
    %cst_11 = arith.constant 0.000000e+00 : f32
    %15 = vector.broadcast %cst_11 : f32 to vector<16x128xf32>
    %16 = arith.maximumf %14, %15 : vector<16x128xf32>
    %c0_12 = arith.constant 0 : index
    %c0_13 = arith.constant 0 : index
    %17 = vector.load %arg6[%c0_12, %c0_13] : memref<1x128xf32, #tpu.memory_space<vmem>>, vector<1x128xf32>
    %18 = vector.broadcast %17 : vector<1x128xf32> to vector<16x128xf32>
    %19 = arith.mulf %16, %18 : vector<16x128xf32>
    %cst_14 = arith.constant dense<0.000000e+00> : vector<16xf32>
    %20 = vector.multi_reduction <add>, %19, %cst_14 [1] : vector<16x128xf32> to vector<16xf32>
    %21 = vector.shape_cast %20 : vector<16xf32> to vector<16x1xf32>
    %c0_15 = arith.constant 0 : index
    %c0_16 = arith.constant 0 : index
    %22 = memref.load %arg7[%c0_15, %c0_16] : memref<1x1xf32, #tpu.memory_space<smem>>
    %23 = vector.broadcast %22 : f32 to vector<16x1xf32>
    %24 = arith.addf %21, %23 : vector<16x1xf32>
    %c0_17 = arith.constant 0 : index
    %c0_18 = arith.constant 0 : index
    %25 = vector.load %arg8[%c0_17, %c0_18] : memref<16x1xf32, #tpu.memory_space<vmem>>, vector<16x1xf32>
    tpu.vector_store %arg8[%c0_17, %c0_18], %24 {strides = array<i32>} : memref<16x1xf32, #tpu.memory_space<vmem>>, vector<16x1xf32>,
    return
  }
  func.func @transform_0(%arg0: i32) -> (i32, i32) {
    %c0_i32 = arith.constant 0 : i32
    %c0_i32_0 = arith.constant 0 : i32
    return %arg0, %c0_i32 : i32, i32
  }
  func.func @transform_1(%arg0: i32) -> (i32, i32) {
    %c0_i32 = arith.constant 0 : i32
    %c0_i32_0 = arith.constant 0 : i32
    %c0_i32_1 = arith.constant 0 : i32
    return %c0_i32, %c0_i32_0 : i32, i32
  }
  func.func @transform_2(%arg0: i32) -> (i32, i32) {
    %c0_i32 = arith.constant 0 : i32
    %c0_i32_0 = arith.constant 0 : i32
    %c0_i32_1 = arith.constant 0 : i32
    return %c0_i32, %c0_i32_0 : i32, i32
  }
  func.func @transform_3(%arg0: i32) -> (i32, i32) {
    %c0_i32 = arith.constant 0 : i32
    %c0_i32_0 = arith.constant 0 : i32
    %c0_i32_1 = arith.constant 0 : i32
    return %c0_i32, %c0_i32_0 : i32, i32
  }
  func.func @transform_4(%arg0: i32) -> (i32, i32) {
    %c0_i32 = arith.constant 0 : i32
    %c0_i32_0 = arith.constant 0 : i32
    %c0_i32_1 = arith.constant 0 : i32
    return %c0_i32, %c0_i32_0 : i32, i32
  }
  func.func @transform_5(%arg0: i32) -> (i32, i32) {
    %c0_i32 = arith.constant 0 : i32
    %c0_i32_0 = arith.constant 0 : i32
    %c0_i32_1 = arith.constant 0 : i32
    return %c0_i32, %c0_i32_0 : i32, i32
  }
  func.func @transform_6(%arg0: i32) -> (i32, i32) {
    %c0_i32 = arith.constant 0 : i32
    %c0_i32_0 = arith.constant 0 : i32
    %c0_i32_1 = arith.constant 0 : i32
    return %c0_i32, %c0_i32_0 : i32, i32
  }
  func.func @transform_7(%arg0: i32) -> (i32, i32) {
    %c0_i32 = arith.constant 0 : i32
    %c0_i32_0 = arith.constant 0 : i32
    return %arg0, %c0_i32 : i32, i32
  }
}

</mosaic_0001>

<bundles_post_ra>
// kernel: tpu_custom_call.1
= control target key start
LH: loop header
LB: loop body
LE: loop exit
PB: predicated region body
PF: predicated region fallthrough
CT: control target
= control target key end

     0   :  { %13 = vsyncpa [#allocation4], 0  ;;  %s619_s0 = inlined_call_operand.hbm [shape: f32[13,32], index: 0, kind: input, shape index: {}]   ;;  %s620_s1 = inlined_call_operand.hbm [shape: bf16[32,256], index: 1, kind: input, shape index: {}]   ;;  %s621_s2 = inlined_call_operand.vmem [shape: f32[1,256], index: 2, kind: input, shape index: {}]   ;;  %s622_s3 = inlined_call_operand.hbm [shape: bf16[256,128], index: 3, kind: input, shape index: {}]   ;;  %s623_s4 = inlined_call_operand.vmem [shape: f32[1,128], index: 4, kind: input, shape index: {}]   ;;  %s624_s5 = inlined_call_operand.vmem [shape: f32[1,128], index: 5, kind: input, shape index: {}]   ;;  %s625_s6 = inlined_call_operand.<no memory space> [shape: f32[1,1], index: 6, kind: input, shape index: {}]   ;;  %s626_s7 = inlined_call_operand.vmem [shape: f32[13,1], index: 7, kind: output, shape index: {}]  }
   0x1   :  { %14 = vsyncpa [#allocation6], 0  ;;  %s510_s24 = smov [#allocation5]   ;;  %s511_s26 = smov [#allocation3]  }
   0x2   :  { %s32_s25 = sshll.u32 %s510_s24, 4  ;;  %s20_s27 = sshll.u32 %s511_s26, 4  ;;  %s33_s25 = int_to_ptr.vmem [resolvable:$true] %s32_s25  ;;  %s558_s27 = int_to_ptr.vmem [resolvable:$true] %s20_s27 }
   0x3   :  { %s440_s30 = scalar_lea.hbm %s620_s1, 512 }
   0x4   :  { %p441_p0 = scmp.ne.s32.totalorder %s620_s1, %s440_s30  ;;  %p444_p1 = scmp.lt.u32.totalorder %s440_s30, %s620_s1 }
   0x6   :  { %p446_p2 = pnand %p444_p1, %p441_p0 }
   0x8   :  { %449 = shalt.err (!%p446_p2)
}
   0x9   :  { %s450_s12 = scalar_lea.vmem %s33_s25, 512  ;;  %p455_p4 = scmp.lt.s32.totalorder %s33_s25, %s33_s25 }
   0xa   :  { %p451_p3 = scmp.ne.s32.totalorder %s33_s25, %s450_s12  ;;  %p456_p5 = scmp.lt.s32.totalorder %s450_s12, %s450_s12 }
   0xc   :  { %p457_p6 = por %p456_p5, %p455_p4 }
   0xe   :  { %p458_p7 = pnand %p457_p6, %p451_p3 }
  0x10   :  { %461 = shalt.err (!%p458_p7)
}
  0x11   :  { %s512_s13 = smov 128   ;;  %s513_s14 = smov 8  }
  0x12   :  { %38 = dma.hbm_to_vmem [thread:$0]  %s620_s1, 512, %s33_s25, [#allocation6], %s512_s13, %s512_s13, %s513_s14  }
  0x13   :  { %s462_s19 = scalar_lea.hbm %s619_s0, 256 }
  0x14   :  { %p463_p8 = scmp.ne.s32.totalorder %s619_s0, %s462_s19  ;;  %p466_p9 = scmp.lt.u32.totalorder %s462_s19, %s619_s0 }
  0x16   :  { %p468_p10 = pnand %p466_p9, %p463_p8 }
  0x18   :  { %471 = shalt.err (!%p468_p10)
}
  0x19   :  { %s472_s24 = scalar_lea.vmem %s558_s27, 256  ;;  %p477_p12 = scmp.lt.s32.totalorder %s558_s27, %s558_s27 }
  0x1a   :  { %p473_p11 = scmp.ne.s32.totalorder %s558_s27, %s472_s24  ;;  %p478_p13 = scmp.lt.s32.totalorder %s472_s24, %s472_s24 }
  0x1c   :  { %p479_p0 = por %p478_p13, %p477_p12 }
  0x1e   :  { %p480_p1 = pnand %p479_p0, %p473_p11 }
  0x20   :  { %483 = shalt.err (!%p480_p1)
}
  0x21   :  { %26 = dma.hbm_to_vmem [thread:$0]  %s619_s0, 256, %s558_s27, [#allocation4], %s512_s13, %s512_s13, %s513_s14  }
  0x22   :  { %s514_s26 = smov [#allocation7]   ;;  %s484_s8 = scalar_lea.hbm %s622_s3, 2048 }
  0x23   :  { %s46_s28 = sshll.u32 %s514_s26, 4  ;;  %p485_p2 = scmp.ne.s32.totalorder %s622_s3, %s484_s8  ;;  %s47_s28 = int_to_ptr.vmem [resolvable:$true] %s46_s28 }
  0x24   :  { %p488_p3 = scmp.lt.u32.totalorder %s484_s8, %s622_s3 }
  0x26   :  { %p490_p4 = pnand %p488_p3, %p485_p2 }
  0x28   :  { %493 = shalt.err (!%p490_p4)
}
  0x29   :  { %s494_s15 = scalar_lea.vmem %s47_s28, 2048  ;;  %p499_p6 = scmp.lt.s32.totalorder %s47_s28, %s47_s28 }
  0x2a   :  { %p495_p5 = scmp.ne.s32.totalorder %s47_s28, %s494_s15  ;;  %p500_p7 = scmp.lt.s32.totalorder %s494_s15, %s494_s15 }
  0x2c   :  { %p501_p8 = por %p500_p7, %p499_p6 }
  0x2e   :  { %p502_p9 = pnand %p501_p8, %p495_p5 }
  0x30   :  { %505 = shalt.err (!%p502_p9)
}
  0x31   :  { %s515_s0 = smov 64   ;;  %s516_s27 = smov 4  }
  0x32   :  { %52 = dma.hbm_to_vmem [thread:$0]  %s622_s3, 2048, %s47_s28, [#allocation6], %s515_s0, %s515_s0, %s516_s27  }
  0x33   :  { %506 = dma.done.wait [#allocation4], 256  }
  0x34   :  { %507 = vsyncadd [#allocation4], 4294967040 }
  0x35   :  { %508 = dma.done.wait [#allocation6], 2560  }
  0x36   :  { %509 = vsyncadd [#allocation6], 4294964736  ;;  %v517_v0 = vmov 0   ;;  %v418_v1 = vld [vmem:[#allocation5 + $0x4] ss:$8 sps:$4 sm:$0xff]   ;;  %v69_v5 = vld [vmem:[#allocation3] sm:$0xff]  ;;  %v78_v24 = vlaneseq  ;;  %v353_v59 = vstv %s625_s6 }
  0x37   :  { %144 = vmatprep.mubr.bf16.mxu0 %v517_v0  ;;  %v420_v2 = vld [vmem:[#allocation5] ss:$8 sps:$4 sm:$0xff]   ;;  %112 = vmatprep.subr.bf16.mxu0 %v418_v1  ;;  %v421_v3 = vld [vmem:[#allocation5 + $0x14] ss:$8 sps:$4 sm:$0xff]   ;;  %v423_v4 = vld [vmem:[#allocation5 + $0x10] ss:$8 sps:$4 sm:$0xff]  }
  0x38   :  { %113 = vmatpush1.bf16.msra.mxu0 %v420_v2  ;;  %v70_v6 = vld [vmem:[#allocation3 + $0x8] sm:$0xff]  ;;  %v424_v7 = vld [vmem:[#allocation7 + $0x40] sm:$0xff]   ;;  %v426_v10 = vld [vmem:[#allocation7 + $0x48] sm:$0xff]   ;;  %vm108_vm0 = vcmask 261120   ;;  %v79_v25 = vshrl.u32 %v78_v24, 7  ;;  %vm356_vm1 = vcmask 7168  }
  0x39   :  { %114 = vmatprep.subr.bf16.mxu0 %v421_v3  ;;  %v425_v8 = vld [vmem:[#allocation7] sm:$0xff]   ;;  %v71_v9 = vpack.c.bf16 %v70_v6, %v69_v5  ;;  %388 = vmatprep.subr.bf16.mxu1 %v424_v7  ;;  %v427_v11 = vld [vmem:[#allocation7 + $0x8] sm:$0xff]   ;;  %v428_v12 = vld [vmem:[#allocation7 + $0x50] sm:$0xff]  }
  0x3a   :  { %389 = vmatpush3.bf16.msra.mxu1 %v425_v8  ;;  %v429_v13 = vld [vmem:[#allocation7 + $0x10] sm:$0xff]   ;;  %v430_v14 = vld [vmem:[#allocation7 + $0x58] sm:$0xff]   ;;  %v432_v16 = vld [vmem:[#allocation7 + $0x60] sm:$0xff]   ;;  %v80_v26 = vsub.s32 0, %v79_v25  ;;  %v84_v28 = vsub.s32 1, %v79_v25 }
  0x3b   :  { %390 = vmatprep.subr.bf16.mxu1 %v426_v10  ;;  %v431_v15 = vld [vmem:[#allocation7 + $0x18] sm:$0xff]   ;;  %v433_v17 = vld [vmem:[#allocation7 + $0x20] sm:$0xff]   ;;  %v434_v18 = vld [vmem:[#allocation7 + $0x68] sm:$0xff]  }
  0x3c   :  { %115 = vmatpush1.bf16.msra.mxu0 %v423_v4  ;;  %v435_v19 = vld [vmem:[#allocation7 + $0x28] sm:$0xff]   ;;  %v436_v20 = vld [vmem:[#allocation7 + $0x70] sm:$0xff]   ;;  %v438_v22 = vld [vmem:[#allocation7 + $0x78] sm:$0xff]  }
  0x3d   :  { %v437_v21 = vld [vmem:[#allocation7 + $0x30] sm:$0xff]   ;;  %v439_v23 = vld [vmem:[#allocation7 + $0x38] sm:$0xff]  }
  0x3e   :  { %391 = vmatpush3.bf16.msra.mxu1 %v427_v11  ;;  %v76_v27 = vld [vmem:[%s621_s2] sm:$0x3] }
  0x3f   :  { %369 = vmatmul.mubr.msk.bf16.vlgmr.msra.gmra.mrb[0].mxu0 %vm108_vm0, %v71_v9  ;;  %392 = vmatprep.subr.bf16.mxu1 %v428_v12  ;;  %v81_v29 = vrot.slane %v76_v27, %v80_v26  ;;  %v85_v30 = vrot.slane %v76_v27, %v84_v28  ;;  %v370_v47 = vld [vmem:[%s623_s4] ss:$0 sm:$0xff] }
  0x40   :  { %v387_v53 = vld [vmem:[%s624_s5] ss:$0 sm:$0xff] }
  0x42   :  { %393 = vmatpush3.bf16.msra.mxu1 %v429_v13 }
  0x43   :  { %394 = vmatprep.subr.bf16.mxu1 %v430_v14 }
  0x46   :  { %395 = vmatpush3.bf16.msra.mxu1 %v431_v15 }
  0x47   :  { %396 = vmatprep.subr.bf16.mxu1 %v432_v16 }
  0x4a   :  { %397 = vmatpush3.bf16.msra.mxu1 %v433_v17 }
  0x4b   :  { %398 = vmatprep.subr.bf16.mxu1 %v434_v18 }
  0x4e   :  { %399 = vmatpush3.bf16.msra.mxu1 %v435_v19 }
  0x4f   :  { %400 = vmatprep.subr.bf16.mxu1 %v436_v20 }
  0x52   :  { %401 = vmatpush3.bf16.msra.mxu1 %v437_v21 }
  0x53   :  { %402 = vmatprep.subr.bf16.mxu1 %v438_v22 }
  0x56   :  { %403 = vmatpush3.bf16.msra.mxu1 %v439_v23 }
 0x112   :  { %v146_v31 = vpop.f32.mrb[0].mxu0 }
 0x113   :  { %v147_v32 = vadd.f32 %v146_v31, %v81_v29  ;;  %v148_v33 = vpop.f32.mrb[1].mxu0 }
 0x114   :  { %v149_v34 = vadd.f32 %v148_v33, %v85_v30  ;;  %v150_v35 = vpop.f32.mrb[2].mxu0 }
 0x115   :  { %v151_v36 = vadd.f32 %v150_v35, %v81_v29  ;;  %v152_v37 = vpop.f32.mrb[3].mxu0  ;;  %v155_v39 = vmax.f32 %v147_v32, 0.0 }
 0x116   :  { %v153_v38 = vadd.f32 %v152_v37, %v85_v30  ;;  %v156_v41 = vmax.f32 %v149_v34, 0.0 }
 0x117   :  { %v157_v40 = vmax.f32 %v151_v36, 0.0 }
 0x118   :  { %v158_v42 = vmax.f32 %v153_v38, 0.0 }
 0x119   :  { %v159_v43 = vpack.c.bf16 %v157_v40, %v155_v39 }
 0x11a   :  { %v160_v44 = vpack.c.bf16 %v158_v42, %v156_v41 }
 0x11c   :  { %328 = vmatprep.mubr.bf16.mxu1 %v160_v44 }
 0x11d   :  { %329 = vmatmul.mubr.bf16.vlgmr.msra.gmra.mrb[0].mxu1 %v159_v43 }
 0x1f0   :  { %v404_v45 = vpop.f32.mrb[0].mxu1 }
 0x1f1   :  { %v405_v46 = vpop.f32.mrb[1].mxu1 }
 0x1f2   :  { %v406_v48 = vadd.f32 %v405_v46, %v404_v45  ;;  %v407_v49 = vpop.f32.mrb[2].mxu1 }
 0x1f3   :  { %v408_v50 = vpop.f32.mrb[3].mxu1 }
 0x1f4   :  { %v409_v51 = vadd.f32 %v408_v50, %v407_v49  ;;  %v331_v52 = vadd.f32 %v406_v48, %v370_v47 }
 0x1f6   :  { %v334_v54 = vadd.f32 %v409_v51, %v370_v47  ;;  %v337_v55 = vmax.f32 %v331_v52, 0.0 }
 0x1f8   :  { %v338_v56 = vmax.f32 %v334_v54, 0.0  ;;  %v346_v57 = vmul.f32 %v387_v53, %v337_v55 }
 0x1fa   :  { %348 = vadd.xlane.f32.xlu0 %v346_v57  ;;  %v347_v58 = vmul.f32 %v387_v53, %v338_v56 }
 0x1fe   :  { %350 = vadd.xlane.f32.xlu0 %v347_v58 }
 0x287   :  { %v349_v60 = vpop.xlane.xlu0 %348 }
 0x288   :  { %v354_v61 = vadd.f32 %v353_v59, %v349_v60 }
 0x28a   :  { %357 = vst.msk [vmem:[%s626_s7] sm:$0xff] %vm356_vm1, %v354_v61 }
 0x28b   :  { %v351_v62 = vpop.xlane.xlu0 %350 }
 0x28c   :  { %v355_v63 = vadd.f32 %v353_v59, %v351_v62 }
 0x28e   :  { %358 = vst.msk [vmem:[%s626_s7 + $0x8] sm:$0xff] %vm356_vm1, %v355_v63 }
 0x28f   :  { %363 = vsyncpa [#allocation4], 1 }
 0x290   :  { %364 = vsyncpa [#allocation6], 1 }

</bundles_post_ra>
